<compile_context>
chip_gen: v5e
topology: v5e:2x2
jax: 0.10.0
libtpu: 0.0.40
codegen_flags: <defaults>
</compile_context>

<pallas_src>
import functools

import jax
import jax.numpy as jnp
from jax import lax
from jax.experimental import pallas as pl
from jax.experimental.pallas import tpu as pltpu


def _round_up(x, m):
    return ((x + m - 1) // m) * m


def _gcn_head_kernel(binary, out_channels, n,
                     x_ref, a_ref, w1_ref, b1_ref, w2_ref, b2_ref, o_ref):
    bw = x_ref.shape[0] // n            # windows per block (static)
    pad_out = o_ref.shape[-1]

    a = a_ref[...]                      # [n, n] bf16 (cast in wrapper)
    b1 = b1_ref[...]                    # [1, end] f32
    w2 = w2_ref[...]                    # [end, pad_out] bf16
    b2 = b2_ref[...]                    # [1, pad_out] f32

    # x = activation(x.view(N, -1))   (act_func == 'relu'); VPU work in f32.
    x = jnp.maximum(x_ref[...], 0.0)    # [bw*n, f_in]

    # fc feature matmul for ALL windows at once: [bw*n, f_in] @ [f_in, end]
    h = jnp.dot(x.astype(jnp.bfloat16), w1_ref[...],
                preferred_element_type=jnp.float32)          # [bw*n, end] f32

    # Hoisted softmax lane mask (padded lanes must not contribute).
    if binary:
        lane = lax.broadcasted_iota(jnp.int32, (n, pad_out), dimension=1)
        valid = lane < out_channels

    ys = []
    for i in range(bw):                 # static unroll; n is a multiple of 8
        # fc: GCNConv aggregation  A_hat @ (X W1) + b1
        hi = h[i * n:(i + 1) * n, :]
        hi = jnp.dot(a, hi.astype(jnp.bfloat16),
                     preferred_element_type=jnp.float32) + b1
        # dropout(0.3): identity in eval mode; then activation
        hi = jnp.maximum(hi, 0.0)

        # fc2: GCNConv(end -> out, padded to 128 lanes): A_hat @ (H W2p) + b2p
        yi = jnp.dot(hi.astype(jnp.bfloat16), w2,
                     preferred_element_type=jnp.float32)
        yi = jnp.dot(a, yi.astype(jnp.bfloat16),
                     preferred_element_type=jnp.float32) + b2

        # torch.clamp(x, min=0)
        yi = jnp.maximum(yi, 0.0)

        if binary:
            # torch.nn.Softmax() on 2-D input -> softmax over dim=1.
            ym = jnp.where(valid, yi, -jnp.inf)
            m = jnp.max(ym, axis=-1, keepdims=True)
            e = jnp.where(valid, jnp.exp(ym - m), 0.0)
            denom = jnp.sum(e, axis=-1, keepdims=True)
            yi = e * pl.reciprocal(denom, approx=True)
        ys.append(yi)

    # Single lane-dense full-tile store for the whole block.
    o_ref[...] = jnp.concatenate(ys, axis=0).astype(o_ref.dtype)


def build_normalized_adjacency(edge_index, num_nodes):
    """Dense A_hat = D^-1/2 (A + I) D^-1/2, matching GCNConv's gcn_norm.

    The graph is static -> call ONCE and reuse the result across forwards.
    """
    src = edge_index[0]
    dst = edge_index[1]
    loop = jnp.arange(num_nodes, dtype=edge_index.dtype)      # self loops
    src = jnp.concatenate([src, loop])
    dst = jnp.concatenate([dst, loop])
    a = jnp.zeros((num_nodes, num_nodes), jnp.float32).at[dst, src].add(1.0)
    deg = jnp.sum(a, axis=1)
    d_inv_sqrt = jnp.where(deg > 0, 1.0 / jnp.sqrt(deg), 0.0)
    return d_inv_sqrt[:, None] * a * d_inv_sqrt[None, :]


def output_layer_gcn_forward(x, a_hat, params, *, binary, windows_per_block=8):
    """Forward pass of OutputLayerGCN (act_func='relu', eval mode).

    x:      [B, N, C, T]  batch of windows over one static graph
    a_hat:  [N, N]        precomputed normalized adjacency (cached)
    """
    b, n = x.shape[0], x.shape[1]
    x_flat = x.reshape(b, n, -1).astype(jnp.float32)      # x.view(N, -1) per window
    f_in = x_flat.shape[-1]

    w1, b1, w2, b2 = params
    end = w1.shape[1]
    out_channels = w2.shape[1]

    # Lane-dense padding of the narrow output dim (2 or 1 -> 128): unmasked
    # stores + full MXU lane tiles.  Sliced back after the kernel.
    pad_out = _round_up(max(out_channels, 128), 128)
    w2p = jnp.zeros((end, pad_out), jnp.float32).at[:, :out_channels].set(w2)
    b2p = jnp.zeros((pad_out,), jnp.float32).at[:out_channels].set(b2)

    # bf16 for the shared matmul operands (halves DMA/VMEM; f32 accumulate).
    a_bf16 = a_hat.astype(jnp.bfloat16)
    w1_bf16 = w1.astype(jnp.bfloat16)
    w2p_bf16 = w2p.astype(jnp.bfloat16)

    # Group windows into blocks to amortize per-grid-step overhead.
    bw = max(1, min(windows_per_block, b))
    b_pad = _round_up(b, bw)
    if b_pad != b:
        x_flat = jnp.pad(x_flat, ((0, b_pad - b), (0, 0), (0, 0)))
    num_blocks = b_pad // bw
    x_blocks = x_flat.reshape(num_blocks, bw * n, f_in)

    kernel = functools.partial(_gcn_head_kernel, binary, out_channels, n)
    grid_spec = pltpu.PrefetchScalarGridSpec(
        num_scalar_prefetch=0,
        grid=(num_blocks,),                               # one window-block / step
        in_specs=[
            pl.BlockSpec((None, bw * n, f_in), lambda i: (i, 0, 0)),  # x block
            pl.BlockSpec((n, n), lambda i: (0, 0)),                   # A_hat (shared)
            pl.BlockSpec((f_in, end), lambda i: (0, 0)),              # W1
            pl.BlockSpec((1, end), lambda i: (0, 0)),                 # b1
            pl.BlockSpec((end, pad_out), lambda i: (0, 0)),           # W2 (padded)
            pl.BlockSpec((1, pad_out), lambda i: (0, 0)),             # b2 (padded)
        ],
        out_specs=pl.BlockSpec((None, bw * n, pad_out), lambda i: (i, 0, 0)),
    )
    out_padded = pl.pallas_call(
        kernel,
        out_shape=jax.ShapeDtypeStruct((num_blocks, bw * n, pad_out), jnp.float32),
        grid_spec=grid_spec,
        compiler_params=pltpu.CompilerParams(
            dimension_semantics=("parallel",)),           # megacore sharding on v7x
    )(x_blocks, a_bf16, w1_bf16, b1.astype(jnp.float32)[None, :],
      w2p_bf16, b2p[None, :])

    out = out_padded.reshape(b_pad, n, pad_out)
    return out[:b, :, :out_channels]


def init_params(key, in_channels, end_channels, out_channels):
    k1, k2, k3, k4 = jax.random.split(key, 4)
    # GCNConv stores weight as [out, in]; we keep it pre-transposed [in, out].
    w1 = jax.random.normal(k1, (in_channels, end_channels), jnp.float32) * 0.1
    b1 = jax.random.normal(k2, (end_channels,), jnp.float32) * 0.1
    w2 = jax.random.normal(k3, (end_channels, out_channels), jnp.float32) * 0.1
    b2 = jax.random.normal(k4, (out_channels,), jnp.float32) * 0.1
    return w1, b1, w2, b2


def _reference_forward(x, a_hat, params, *, binary):
    """Pure-JAX f32 reference (same math, no padding/bf16)."""
    w1, b1, w2, b2 = params
    b, n = x.shape[0], x.shape[1]
    xf = jnp.maximum(x.reshape(b, n, -1).astype(jnp.float32), 0.0)
    h = jnp.einsum('nm,bmf->bnf', a_hat, jnp.einsum('bnf,fe->bne', xf, w1)) + b1
    h = jnp.maximum(h, 0.0)
    y = jnp.einsum('nm,bmf->bnf', a_hat, jnp.einsum('bne,eo->bno', h, w2)) + b2
    y = jnp.maximum(y, 0.0)
    if binary:
        y = jax.nn.softmax(y, axis=-1)
    return y


if __name__ == "__main__":
    key = jax.random.PRNGKey(0)
    kx, kp = jax.random.split(key)

    # Small shapes: B=4 windows, N=16 nodes, C=4 channels, T=8 steps.
    B, N, C, T = 4, 16, 4, 8
    in_channels = C * T           # 32
    end_channels = 32
    binary = True
    out_channels = 2 if binary else 1

    x = jax.random.normal(kx, (B, N, C, T), jnp.float32)

    # Deterministic bidirectional ring graph; A_hat built once and cached.
    src = jnp.arange(N, dtype=jnp.int32)
    dst = (src + 1) % N
    edge_index = jnp.stack(
        [jnp.concatenate([src, dst]), jnp.concatenate([dst, src])], axis=0)
    a_hat = build_normalized_adjacency(edge_index, N)

    params = init_params(kp, in_channels, end_channels, out_channels)

    out = output_layer_gcn_forward(x, a_hat, params, binary=binary)
    out = jax.block_until_ready(out)

    assert out.shape == (B, N, out_channels)
    if binary:
        # Rows of the softmax output must sum to ~1 (approx reciprocal on EUP).
        assert bool(jnp.allclose(jnp.sum(out, axis=-1), 1.0, atol=1e-2))

    # Check against the pure-JAX f32 reference (bf16 MXU inputs -> loose tol).
    ref = _reference_forward(x, a_hat, params, binary=binary)
    assert bool(jnp.allclose(out, ref, atol=5e-2)), "mismatch vs reference"

    print("KERNEL_OK")
</pallas_src>

<mosaic_0001>
module attributes {stable_mosaic.version = 11 : i64} {
  func.func @_gcn_head_kernel(%arg0: i32, %arg1: memref<1x64x32xf32, #tpu.memory_space<vmem>>, %arg2: memref<16x16xbf16, #tpu.memory_space<vmem>>, %arg3: memref<32x32xbf16, #tpu.memory_space<vmem>>, %arg4: memref<1x32xf32, #tpu.memory_space<vmem>>, %arg5: memref<32x128xbf16, #tpu.memory_space<vmem>>, %arg6: memref<1x128xf32, #tpu.memory_space<vmem>>, %arg7: memref<1x64x128xf32, #tpu.memory_space<vmem>>) attributes {dimension_semantics = [#tpu.dimension_semantics<parallel>], iteration_bounds = array<i64: 1>, scalar_prefetch = 0 : i64, scratch_operands = 0 : i64, tpu.core_type = #tpu.core_type<tc>, window_params = [{transform_indices = @transform_0, window_bounds = array<i64: 1, 64, 32>}, {pipeline_mode = #tpu.pipeline_mode<synchronous>, transform_indices = @transform_1, window_bounds = array<i64: 16, 16>}, {pipeline_mode = #tpu.pipeline_mode<synchronous>, transform_indices = @transform_2, window_bounds = array<i64: 32, 32>}, {pipeline_mode = #tpu.pipeline_mode<synchronous>, transform_indices = @transform_3, window_bounds = array<i64: 1, 32>}, {pipeline_mode = #tpu.pipeline_mode<synchronous>, transform_indices = @transform_4, window_bounds = array<i64: 32, 128>}, {pipeline_mode = #tpu.pipeline_mode<synchronous>, transform_indices = @transform_5, window_bounds = array<i64: 1, 128>}, {transform_indices = @transform_6, window_bounds = array<i64: 1, 64, 128>}]} {
    %c0 = arith.constant 0 : index
    %c0_0 = arith.constant 0 : index
    %0 = vector.load %arg2[%c0, %c0_0] : memref<16x16xbf16, #tpu.memory_space<vmem>>, vector<16x16xbf16>
    %c0_1 = arith.constant 0 : index
    %c0_2 = arith.constant 0 : index
    %1 = vector.load %arg4[%c0_1, %c0_2] : memref<1x32xf32, #tpu.memory_space<vmem>>, vector<1x32xf32>
    %c0_3 = arith.constant 0 : index
    %c0_4 = arith.constant 0 : index
    %2 = vector.load %arg5[%c0_3, %c0_4] : memref<32x128xbf16, #tpu.memory_space<vmem>>, vector<32x128xbf16>
    %c0_5 = arith.constant 0 : index
    %c0_6 = arith.constant 0 : index
    %3 = vector.load %arg6[%c0_5, %c0_6] : memref<1x128xf32, #tpu.memory_space<vmem>>, vector<1x128xf32>
    %c0_7 = arith.constant 0 : index
    %c0_8 = arith.constant 0 : index
    %c0_9 = arith.constant 0 : index
    %4 = vector.load %arg1[%c0_7, %c0_8, %c0_9] : memref<1x64x32xf32, #tpu.memory_space<vmem>>, vector<1x64x32xf32>
    %5 = vector.shape_cast %4 : vector<1x64x32xf32> to vector<64x32xf32>
    %cst = arith.constant 0.000000e+00 : f32
    %6 = vector.broadcast %cst : f32 to vector<64x32xf32>
    %7 = arith.maximumf %5, %6 : vector<64x32xf32>
    %8 = arith.truncf %7 : vector<64x32xf32> to vector<64x32xbf16>
    %c0_10 = arith.constant 0 : index
    %c0_11 = arith.constant 0 : index
    %9 = vector.load %arg3[%c0_10, %c0_11] : memref<32x32xbf16, #tpu.memory_space<vmem>>, vector<32x32xbf16>
    %cst_12 = arith.constant dense<0.000000e+00> : vector<64x32xf32>
    %10 = tpu.matmul %8, %9, %cst_12 {dimension_numbers = #tpu.dot_dimension_numbers<[1], [0], [0], [1], [0, 0, 1, 1], [], []>} : vector<64x32xbf16>, vector<32x32xbf16>, vector<64x32xf32> -> vector<64x32xf32>
    %11 = tpu.iota {dimensions = array<i32: 1>} : vector<16x128xi32>
    %c2_i32 = arith.constant 2 : i32
    %12 = vector.broadcast %c2_i32 : i32 to vector<16x128xi32>
    %13 = arith.cmpi slt, %11, %12 : vector<16x128xi32>
    %14 = vector.extract_strided_slice %10 {offsets = [0, 0], sizes = [16, 32], strides = [1, 1]} : vector<64x32xf32> to vector<16x32xf32>
    %15 = arith.truncf %14 : vector<16x32xf32> to vector<16x32xbf16>
    %cst_13 = arith.constant dense<0.000000e+00> : vector<16x32xf32>
    %16 = tpu.matmul %0, %15, %cst_13 {dimension_numbers = #tpu.dot_dimension_numbers<[1], [0], [0], [1], [0, 0, 1, 1], [], []>} : vector<16x16xbf16>, vector<16x32xbf16>, vector<16x32xf32> -> vector<16x32xf32>
    %17 = vector.broadcast %1 : vector<1x32xf32> to vector<16x32xf32>
    %18 = arith.addf %16, %17 : vector<16x32xf32>
    %cst_14 = arith.constant 0.000000e+00 : f32
    %19 = vector.broadcast %cst_14 : f32 to vector<16x32xf32>
    %20 = arith.maximumf %18, %19 : vector<16x32xf32>
    %21 = arith.truncf %20 : vector<16x32xf32> to vector<16x32xbf16>
    %cst_15 = arith.constant dense<0.000000e+00> : vector<16x128xf32>
    %22 = tpu.matmul %21, %2, %cst_15 {dimension_numbers = #tpu.dot_dimension_numbers<[1], [0], [0], [1], [0, 0, 1, 1], [], []>} : vector<16x32xbf16>, vector<32x128xbf16>, vector<16x128xf32> -> vector<16x128xf32>
    %23 = arith.truncf %22 : vector<16x128xf32> to vector<16x128xbf16>
    %cst_16 = arith.constant dense<0.000000e+00> : vector<16x128xf32>
    %24 = tpu.matmul %0, %23, %cst_16 {dimension_numbers = #tpu.dot_dimension_numbers<[1], [0], [0], [1], [0, 0, 1, 1], [], []>} : vector<16x16xbf16>, vector<16x128xbf16>, vector<16x128xf32> -> vector<16x128xf32>
    %25 = vector.broadcast %3 : vector<1x128xf32> to vector<16x128xf32>
    %26 = arith.addf %24, %25 : vector<16x128xf32>
    %cst_17 = arith.constant 0.000000e+00 : f32
    %27 = vector.broadcast %cst_17 : f32 to vector<16x128xf32>
    %28 = arith.maximumf %26, %27 : vector<16x128xf32>
    %cst_18 = arith.constant 0xFF800000 : f32
    %29 = vector.broadcast %cst_18 : f32 to vector<16x128xf32>
    %30 = arith.select %13, %28, %29 : vector<16x128xi1>, vector<16x128xf32>
    %cst_19 = arith.constant dense<0xFF800000> : vector<16xf32>
    %31 = vector.multi_reduction <maximumf>, %30, %cst_19 [1] : vector<16x128xf32> to vector<16xf32>
    %32 = vector.shape_cast %31 : vector<16xf32> to vector<16x1xf32>
    %33 = vector.broadcast %32 : vector<16x1xf32> to vector<16x128xf32>
    %34 = arith.subf %30, %33 : vector<16x128xf32>
    %35 = math.exp %34 : vector<16x128xf32>
    %cst_20 = arith.constant 0.000000e+00 : f32
    %36 = vector.broadcast %cst_20 : f32 to vector<16x128xf32>
    %37 = arith.select %13, %35, %36 : vector<16x128xi1>, vector<16x128xf32>
    %cst_21 = arith.constant dense<0.000000e+00> : vector<16xf32>
    %38 = vector.multi_reduction <add>, %37, %cst_21 [1] : vector<16x128xf32> to vector<16xf32>
    %39 = vector.shape_cast %38 : vector<16xf32> to vector<16x1xf32>
    %40 = tpu.reciprocal %39 {approx = true} : vector<16x1xf32> -> vector<16x1xf32>
    %41 = vector.broadcast %40 : vector<16x1xf32> to vector<16x128xf32>
    %42 = arith.mulf %37, %41 : vector<16x128xf32>
    %43 = vector.extract_strided_slice %10 {offsets = [16, 0], sizes = [16, 32], strides = [1, 1]} : vector<64x32xf32> to vector<16x32xf32>
    %44 = arith.truncf %43 : vector<16x32xf32> to vector<16x32xbf16>
    %cst_22 = arith.constant dense<0.000000e+00> : vector<16x32xf32>
    %45 = tpu.matmul %0, %44, %cst_22 {dimension_numbers = #tpu.dot_dimension_numbers<[1], [0], [0], [1], [0, 0, 1, 1], [], []>} : vector<16x16xbf16>, vector<16x32xbf16>, vector<16x32xf32> -> vector<16x32xf32>
    %46 = vector.broadcast %1 : vector<1x32xf32> to vector<16x32xf32>
    %47 = arith.addf %45, %46 : vector<16x32xf32>
    %cst_23 = arith.constant 0.000000e+00 : f32
    %48 = vector.broadcast %cst_23 : f32 to vector<16x32xf32>
    %49 = arith.maximumf %47, %48 : vector<16x32xf32>
    %50 = arith.truncf %49 : vector<16x32xf32> to vector<16x32xbf16>
    %cst_24 = arith.constant dense<0.000000e+00> : vector<16x128xf32>
    %51 = tpu.matmul %50, %2, %cst_24 {dimension_numbers = #tpu.dot_dimension_numbers<[1], [0], [0], [1], [0, 0, 1, 1], [], []>} : vector<16x32xbf16>, vector<32x128xbf16>, vector<16x128xf32> -> vector<16x128xf32>
    %52 = arith.truncf %51 : vector<16x128xf32> to vector<16x128xbf16>
    %cst_25 = arith.constant dense<0.000000e+00> : vector<16x128xf32>
    %53 = tpu.matmul %0, %52, %cst_25 {dimension_numbers = #tpu.dot_dimension_numbers<[1], [0], [0], [1], [0, 0, 1, 1], [], []>} : vector<16x16xbf16>, vector<16x128xbf16>, vector<16x128xf32> -> vector<16x128xf32>
    %54 = vector.broadcast %3 : vector<1x128xf32> to vector<16x128xf32>
    %55 = arith.addf %53, %54 : vector<16x128xf32>
    %cst_26 = arith.constant 0.000000e+00 : f32
    %56 = vector.broadcast %cst_26 : f32 to vector<16x128xf32>
    %57 = arith.maximumf %55, %56 : vector<16x128xf32>
    %cst_27 = arith.constant 0xFF800000 : f32
    %58 = vector.broadcast %cst_27 : f32 to vector<16x128xf32>
    %59 = arith.select %13, %57, %58 : vector<16x128xi1>, vector<16x128xf32>
    %cst_28 = arith.constant dense<0xFF800000> : vector<16xf32>
    %60 = vector.multi_reduction <maximumf>, %59, %cst_28 [1] : vector<16x128xf32> to vector<16xf32>
    %61 = vector.shape_cast %60 : vector<16xf32> to vector<16x1xf32>
    %62 = vector.broadcast %61 : vector<16x1xf32> to vector<16x128xf32>
    %63 = arith.subf %59, %62 : vector<16x128xf32>
    %64 = math.exp %63 : vector<16x128xf32>
    %cst_29 = arith.constant 0.000000e+00 : f32
    %65 = vector.broadcast %cst_29 : f32 to vector<16x128xf32>
    %66 = arith.select %13, %64, %65 : vector<16x128xi1>, vector<16x128xf32>
    %cst_30 = arith.constant dense<0.000000e+00> : vector<16xf32>
    %67 = vector.multi_reduction <add>, %66, %cst_30 [1] : vector<16x128xf32> to vector<16xf32>
    %68 = vector.shape_cast %67 : vector<16xf32> to vector<16x1xf32>
    %69 = tpu.reciprocal %68 {approx = true} : vector<16x1xf32> -> vector<16x1xf32>
    %70 = vector.broadcast %69 : vector<16x1xf32> to vector<16x128xf32>
    %71 = arith.mulf %66, %70 : vector<16x128xf32>
    %72 = vector.extract_strided_slice %10 {offsets = [32, 0], sizes = [16, 32], strides = [1, 1]} : vector<64x32xf32> to vector<16x32xf32>
    %73 = arith.truncf %72 : vector<16x32xf32> to vector<16x32xbf16>
    %cst_31 = arith.constant dense<0.000000e+00> : vector<16x32xf32>
    %74 = tpu.matmul %0, %73, %cst_31 {dimension_numbers = #tpu.dot_dimension_numbers<[1], [0], [0], [1], [0, 0, 1, 1], [], []>} : vector<16x16xbf16>, vector<16x32xbf16>, vector<16x32xf32> -> vector<16x32xf32>
    %75 = vector.broadcast %1 : vector<1x32xf32> to vector<16x32xf32>
    %76 = arith.addf %74, %75 : vector<16x32xf32>
    %cst_32 = arith.constant 0.000000e+00 : f32
    %77 = vector.broadcast %cst_32 : f32 to vector<16x32xf32>
    %78 = arith.maximumf %76, %77 : vector<16x32xf32>
    %79 = arith.truncf %78 : vector<16x32xf32> to vector<16x32xbf16>
    %cst_33 = arith.constant dense<0.000000e+00> : vector<16x128xf32>
    %80 = tpu.matmul %79, %2, %cst_33 {dimension_numbers = #tpu.dot_dimension_numbers<[1], [0], [0], [1], [0, 0, 1, 1], [], []>} : vector<16x32xbf16>, vector<32x128xbf16>, vector<16x128xf32> -> vector<16x128xf32>
    %81 = arith.truncf %80 : vector<16x128xf32> to vector<16x128xbf16>
    %cst_34 = arith.constant dense<0.000000e+00> : vector<16x128xf32>
    %82 = tpu.matmul %0, %81, %cst_34 {dimension_numbers = #tpu.dot_dimension_numbers<[1], [0], [0], [1], [0, 0, 1, 1], [], []>} : vector<16x16xbf16>, vector<16x128xbf16>, vector<16x128xf32> -> vector<16x128xf32>
    %83 = vector.broadcast %3 : vector<1x128xf32> to vector<16x128xf32>
    %84 = arith.addf %82, %83 : vector<16x128xf32>
    %cst_35 = arith.constant 0.000000e+00 : f32
    %85 = vector.broadcast %cst_35 : f32 to vector<16x128xf32>
    %86 = arith.maximumf %84, %85 : vector<16x128xf32>
    %cst_36 = arith.constant 0xFF800000 : f32
    %87 = vector.broadcast %cst_36 : f32 to vector<16x128xf32>
    %88 = arith.select %13, %86, %87 : vector<16x128xi1>, vector<16x128xf32>
    %cst_37 = arith.constant dense<0xFF800000> : vector<16xf32>
    %89 = vector.multi_reduction <maximumf>, %88, %cst_37 [1] : vector<16x128xf32> to vector<16xf32>
    %90 = vector.shape_cast %89 : vector<16xf32> to vector<16x1xf32>
    %91 = vector.broadcast %90 : vector<16x1xf32> to vector<16x128xf32>
    %92 = arith.subf %88, %91 : vector<16x128xf32>
    %93 = math.exp %92 : vector<16x128xf32>
    %cst_38 = arith.constant 0.000000e+00 : f32
    %94 = vector.broadcast %cst_38 : f32 to vector<16x128xf32>
    %95 = arith.select %13, %93, %94 : vector<16x128xi1>, vector<16x128xf32>
    %cst_39 = arith.constant dense<0.000000e+00> : vector<16xf32>
    %96 = vector.multi_reduction <add>, %95, %cst_39 [1] : vector<16x128xf32> to vector<16xf32>
    %97 = vector.shape_cast %96 : vector<16xf32> to vector<16x1xf32>
    %98 = tpu.reciprocal %97 {approx = true} : vector<16x1xf32> -> vector<16x1xf32>
    %99 = vector.broadcast %98 : vector<16x1xf32> to vector<16x128xf32>
    %100 = arith.mulf %95, %99 : vector<16x128xf32>
    %101 = vector.extract_strided_slice %10 {offsets = [48, 0], sizes = [16, 32], strides = [1, 1]} : vector<64x32xf32> to vector<16x32xf32>
    %102 = arith.truncf %101 : vector<16x32xf32> to vector<16x32xbf16>
    %cst_40 = arith.constant dense<0.000000e+00> : vector<16x32xf32>
    %103 = tpu.matmul %0, %102, %cst_40 {dimension_numbers = #tpu.dot_dimension_numbers<[1], [0], [0], [1], [0, 0, 1, 1], [], []>} : vector<16x16xbf16>, vector<16x32xbf16>, vector<16x32xf32> -> vector<16x32xf32>
    %104 = vector.broadcast %1 : vector<1x32xf32> to vector<16x32xf32>
    %105 = arith.addf %103, %104 : vector<16x32xf32>
    %cst_41 = arith.constant 0.000000e+00 : f32
    %106 = vector.broadcast %cst_41 : f32 to vector<16x32xf32>
    %107 = arith.maximumf %105, %106 : vector<16x32xf32>
    %108 = arith.truncf %107 : vector<16x32xf32> to vector<16x32xbf16>
    %cst_42 = arith.constant dense<0.000000e+00> : vector<16x128xf32>
    %109 = tpu.matmul %108, %2, %cst_42 {dimension_numbers = #tpu.dot_dimension_numbers<[1], [0], [0], [1], [0, 0, 1, 1], [], []>} : vector<16x32xbf16>, vector<32x128xbf16>, vector<16x128xf32> -> vector<16x128xf32>
    %110 = arith.truncf %109 : vector<16x128xf32> to vector<16x128xbf16>
    %cst_43 = arith.constant dense<0.000000e+00> : vector<16x128xf32>
    %111 = tpu.matmul %0, %110, %cst_43 {dimension_numbers = #tpu.dot_dimension_numbers<[1], [0], [0], [1], [0, 0, 1, 1], [], []>} : vector<16x16xbf16>, vector<16x128xbf16>, vector<16x128xf32> -> vector<16x128xf32>
    %112 = vector.broadcast %3 : vector<1x128xf32> to vector<16x128xf32>
    %113 = arith.addf %111, %112 : vector<16x128xf32>
    %cst_44 = arith.constant 0.000000e+00 : f32
    %114 = vector.broadcast %cst_44 : f32 to vector<16x128xf32>
    %115 = arith.maximumf %113, %114 : vector<16x128xf32>
    %cst_45 = arith.constant 0xFF800000 : f32
    %116 = vector.broadcast %cst_45 : f32 to vector<16x128xf32>
    %117 = arith.select %13, %115, %116 : vector<16x128xi1>, vector<16x128xf32>
    %cst_46 = arith.constant dense<0xFF800000> : vector<16xf32>
    %118 = vector.multi_reduction <maximumf>, %117, %cst_46 [1] : vector<16x128xf32> to vector<16xf32>
    %119 = vector.shape_cast %118 : vector<16xf32> to vector<16x1xf32>
    %120 = vector.broadcast %119 : vector<16x1xf32> to vector<16x128xf32>
    %121 = arith.subf %117, %120 : vector<16x128xf32>
    %122 = math.exp %121 : vector<16x128xf32>
    %cst_47 = arith.constant 0.000000e+00 : f32
    %123 = vector.broadcast %cst_47 : f32 to vector<16x128xf32>
    %124 = arith.select %13, %122, %123 : vector<16x128xi1>, vector<16x128xf32>
    %cst_48 = arith.constant dense<0.000000e+00> : vector<16xf32>
    %125 = vector.multi_reduction <add>, %124, %cst_48 [1] : vector<16x128xf32> to vector<16xf32>
    %126 = vector.shape_cast %125 : vector<16xf32> to vector<16x1xf32>
    %127 = tpu.reciprocal %126 {approx = true} : vector<16x1xf32> -> vector<16x1xf32>
    %128 = vector.broadcast %127 : vector<16x1xf32> to vector<16x128xf32>
    %129 = arith.mulf %124, %128 : vector<16x128xf32>
    %130 = tpu.concatenate %42, %71, %100, %129 in 0 : vector<16x128xf32>, vector<16x128xf32>, vector<16x128xf32>, vector<16x128xf32> -> vector<64x128xf32>
    %c0_49 = arith.constant 0 : index
    %c0_50 = arith.constant 0 : index
    %c0_51 = arith.constant 0 : index
    %131 = vector.load %arg7[%c0_49, %c0_50, %c0_51] : memref<1x64x128xf32, #tpu.memory_space<vmem>>, vector<1x64x128xf32>
    %132 = vector.shape_cast %131 : vector<1x64x128xf32> to vector<64x128xf32>
    %133 = vector.shape_cast %130 : vector<64x128xf32> to vector<1x64x128xf32>
    tpu.vector_store %arg7[%c0_49, %c0_50, %c0_51], %133 {strides = array<i32>} : memref<1x64x128xf32, #tpu.memory_space<vmem>>, vector<1x64x128xf32>,
    return
  }
  func.func @transform_0(%arg0: i32) -> (i32, i32, i32) {
    %c0_i32 = arith.constant 0 : i32
    %c0_i32_0 = arith.constant 0 : i32
    %c0_i32_1 = arith.constant 0 : i32
    return %arg0, %c0_i32, %c0_i32_0 : i32, i32, i32
  }
  func.func @transform_1(%arg0: i32) -> (i32, i32) {
    %c0_i32 = arith.constant 0 : i32
    %c0_i32_0 = arith.constant 0 : i32
    %c0_i32_1 = arith.constant 0 : i32
    return %c0_i32, %c0_i32_0 : i32, i32
  }
  func.func @transform_2(%arg0: i32) -> (i32, i32) {
    %c0_i32 = arith.constant 0 : i32
    %c0_i32_0 = arith.constant 0 : i32
    %c0_i32_1 = arith.constant 0 : i32
    return %c0_i32, %c0_i32_0 : i32, i32
  }
  func.func @transform_3(%arg0: i32) -> (i32, i32) {
    %c0_i32 = arith.constant 0 : i32
    %c0_i32_0 = arith.constant 0 : i32
    %c0_i32_1 = arith.constant 0 : i32
    return %c0_i32, %c0_i32_0 : i32, i32
  }
  func.func @transform_4(%arg0: i32) -> (i32, i32) {
    %c0_i32 = arith.constant 0 : i32
    %c0_i32_0 = arith.constant 0 : i32
    %c0_i32_1 = arith.constant 0 : i32
    return %c0_i32, %c0_i32_0 : i32, i32
  }
  func.func @transform_5(%arg0: i32) -> (i32, i32) {
    %c0_i32 = arith.constant 0 : i32
    %c0_i32_0 = arith.constant 0 : i32
    %c0_i32_1 = arith.constant 0 : i32
    return %c0_i32, %c0_i32_0 : i32, i32
  }
  func.func @transform_6(%arg0: i32) -> (i32, i32, i32) {
    %c0_i32 = arith.constant 0 : i32
    %c0_i32_0 = arith.constant 0 : i32
    %c0_i32_1 = arith.constant 0 : i32
    return %arg0, %c0_i32, %c0_i32_0 : i32, i32, i32
  }
}

</mosaic_0001>

<bundles_post_ra>
// kernel: tpu_custom_call.1
= control target key start
LH: loop header
LB: loop body
LE: loop exit
PB: predicated region body
PF: predicated region fallthrough
CT: control target
= control target key end

     0   :  { %s724_s0 = inlined_call_operand.vmem [shape: f32[1,64,32], index: 0, kind: input, shape index: {}]   ;;  %s725_s1 = inlined_call_operand.vmem [shape: bf16[16,16], index: 1, kind: input, shape index: {}]   ;;  %s726_s2 = inlined_call_operand.vmem [shape: bf16[32,32], index: 2, kind: input, shape index: {}]   ;;  %s727_s3 = inlined_call_operand.vmem [shape: f32[1,32], index: 3, kind: input, shape index: {}]   ;;  %s728_s4 = inlined_call_operand.vmem [shape: bf16[32,128], index: 4, kind: input, shape index: {}]   ;;  %s729_s5 = inlined_call_operand.vmem [shape: f32[1,128], index: 5, kind: input, shape index: {}]   ;;  %s730_s6 = inlined_call_operand.hbm [shape: f32[1,64,128], index: 6, kind: output, shape index: {}]  }
   0x1   :  { %v503_v0 = vld [vmem:[%s726_s2 + $0x8] sm:$0xff]  ;;  %v33_v1 = vld [vmem:[%s724_s0] sm:$0xff] }
   0x2   :  { %v34_v2 = vld [vmem:[%s724_s0 + $0x8] sm:$0xff]  ;;  %v41_v3 = vmax.f32 %v33_v1, 0.0  ;;  %88 = vmatpush.bf16.msra.mxu0 %v503_v0  ;;  %v502_v4 = vld [vmem:[%s726_s2] sm:$0xff] }
   0x3   :  { %v42_v5 = vmax.f32 %v34_v2, 0.0 }
   0x4   :  { %11 = vsyncpa [#allocation3], 0  ;;  %vm69_vm0 = vcmask 261120   ;;  %v35_v7 = vld [vmem:[%s724_s0 + $0x10] sm:$0xff]  ;;  %v36_v8 = vld [vmem:[%s724_s0 + $0x18] sm:$0xff]  ;;  %vm123_vm1 = vcmask 130048  }
   0x5   :  { %v49_v6 = vpack.c.bf16 %v42_v5, %v41_v3  ;;  %v43_v9 = vmax.f32 %v35_v7, 0.0  ;;  %v44_v10 = vmax.f32 %v36_v8, 0.0  ;;  %v37_v12 = vld [vmem:[%s724_s0 + $0x20] sm:$0xff]  ;;  %v38_v13 = vld [vmem:[%s724_s0 + $0x28] sm:$0xff]  ;;  %v39_v19 = vld [vmem:[%s724_s0 + $0x30] sm:$0xff]  ;;  %v111_v5 = vlaneseq  ;;  %s451_s25 = sshll.u32 %s730_s6, 4  ;;  %s452_s25 = int_to_ptr.hbm [resolvable:$true] %s451_s25 }
   0x6   :  { %89 = vmatpush.bf16.msra.mxu0 %v502_v4  ;;  %v45_v14 = vmax.f32 %v37_v12, 0.0  ;;  %v46_v15 = vmax.f32 %v38_v13, 0.0  ;;  %v40_v20 = vld [vmem:[%s724_s0 + $0x38] sm:$0xff]  ;;  %v641_v22 = vld [vmem:[%s725_s1] sm:$0xff]  ;;  %v47_v23 = vmax.f32 %v39_v19, 0.0  ;;  %v501_v26 = vld [vmem:[%s728_s4 + $0x8] sm:$0xff] }
   0x7   :  { %v50_v11 = vpack.c.bf16 %v44_v10, %v43_v9  ;;  %v48_v24 = vmax.f32 %v40_v20, 0.0  ;;  %165 = vmatpush.bf16.msra.mxu2 %v501_v26  ;;  %v500_v27 = vld [vmem:[%s728_s4] sm:$0xff]  ;;  %v672_v7 = vand.u32 127, %v111_v5  ;;  %s568_s26 = smov 128   ;;  %s569_s27 = smov 8  }
   0x8   :  { %v51_v16 = vpack.c.bf16 %v46_v15, %v45_v14  ;;  %v507_v33 = vld [vmem:[%s727_s3] ss:$0 sm:$0xff] }
   0x9   :  { %471 = vmatmul.msk.bf16.vlgmr.msra.gmra.mxu0 %vm69_vm0, %v49_v6  ;;  %v52_v25 = vpack.c.bf16 %v48_v24, %v47_v23  ;;  %v670_v6 = vld [vmem:[%s729_s5] ss:$0 sm:$0xff]  ;;  %vm113_vm2 = vcmp.lt.s32.totalorder %v672_v7, 2  ;;  %s567_s5 = smov [#allocation2]  }
   0xa   :  { %s449_s22 = sshll.u32 %s567_s5, 4  ;;  %s450_s22 = int_to_ptr.vmem [resolvable:$true] %s449_s22 }
   0xb   :  { %166 = vmatpush.bf16.msra.mxu2 %v500_v27 }
  0x19   :  { %472 = vmatmul.msk.bf16.gmra.mxu0 %vm69_vm0, %v50_v11 }
  0x29   :  { %473 = vmatmul.msk.bf16.gmra.mxu0 %vm69_vm0, %v51_v16 }
  0x39   :  { %474 = vmatmul.msk.bf16.gmra.mxu0 %vm69_vm0, %v52_v25 }
  0x86   :  { %v91_v17 = vpop.f32.mrf.mxu0 }
  0x8e   :  { %v93_v18 = vpop.f32.mrf.mxu0 }
  0x8f   :  { %v114_v21 = vpack.c.bf16 %v93_v18, %v91_v17 }
  0x91   :  { %134 = vmatpush.bf16.msra.mxu1 %v114_v21 }
  0x94   :  { %479 = vmatmul.msk.bf16.vlgmr.msra.gmra.mxu1 %vm123_vm1, %v641_v22 }
  0x96   :  { %v96_v28 = vpop.f32.mrf.mxu0 }
  0x9e   :  { %v98_v29 = vpop.f32.mrf.mxu0 }
  0x9f   :  { %v215_v30 = vpack.c.bf16 %v98_v29, %v96_v28 }
  0xa1   :  { %223 = vmatpush.bf16.msrb.mxu1 %v215_v30 }
  0xa4   :  { %490 = vmatmul.msk.bf16.vlgmr.msrb.gmra.mxu1 %vm123_vm1, %v641_v22 }
  0xa6   :  { %v101_v31 = vpop.f32.mrf.mxu0 }
  0xae   :  { %v103_v34 = vpop.f32.mrf.mxu0 }
  0xaf   :  { %v289_v35 = vpack.c.bf16 %v103_v34, %v101_v31 }
  0xb1   :  { %297 = vmatpush.bf16.msra.mxu1 %v289_v35 }
  0xb4   :  { %493 = vmatmul.msk.bf16.vlgmr.msra.gmra.mxu1 %vm123_vm1, %v641_v22 }
  0xb6   :  { %v106_v42 = vpop.f32.mrf.mxu0 }
  0xbe   :  { %v108_v43 = vpop.f32.mrf.mxu0 }
  0xbf   :  { %v363_v44 = vpack.c.bf16 %v108_v43, %v106_v42 }
  0xc1   :  { %371 = vmatpush.bf16.msrb.mxu1 %v363_v44 }
  0xc4   :  { %496 = vmatmul.msk.bf16.vlgmr.msrb.gmra.mxu1 %vm123_vm1, %v641_v22 }
 0x111   :  { %v136_v32 = vpop.f32.mrf.mxu1 }
 0x112   :  { %v137_v36 = vadd.f32 %v507_v33, %v136_v32 }
 0x114   :  { %v141_v39 = vmax.f32 %v137_v36, 0.0 }
 0x119   :  { %v138_v37 = vpop.f32.mrf.mxu1 }
 0x11a   :  { %v139_v38 = vadd.f32 %v507_v33, %v138_v37 }
 0x11c   :  { %v142_v40 = vmax.f32 %v139_v38, 0.0 }
 0x11e   :  { %v143_v41 = vpack.c.bf16 %v142_v40, %v141_v39 }
 0x120   :  { %488 = vmatmul.msk.bf16.vlgmr.msra.gmra.mxu2 %vm69_vm0, %v143_v41 }
 0x121   :  { %v225_v45 = vpop.f32.mrf.mxu1 }
 0x122   :  { %v226_v51 = vadd.f32 %v507_v33, %v225_v45 }
 0x124   :  { %v230_v53 = vmax.f32 %v226_v51, 0.0 }
 0x129   :  { %v227_v49 = vpop.f32.mrf.mxu1 }
 0x12a   :  { %v228_v52 = vadd.f32 %v507_v33, %v227_v49 }
 0x12c   :  { %v231_v54 = vmax.f32 %v228_v52, 0.0 }
 0x12e   :  { %v232_v55 = vpack.c.bf16 %v231_v54, %v230_v53 }
 0x131   :  { %v299_v50 = vpop.f32.mrf.mxu1 }
 0x132   :  { %v300_v57 = vadd.f32 %v507_v33, %v299_v50 }
 0x134   :  { %v304_v60 = vmax.f32 %v300_v57, 0.0 }
 0x139   :  { %v301_v56 = vpop.f32.mrf.mxu1 }
 0x13a   :  { %v302_v58 = vadd.f32 %v507_v33, %v301_v56 }
 0x13c   :  { %v305_v61 = vmax.f32 %v302_v58, 0.0 }
 0x13e   :  { %v306_v62 = vpack.c.bf16 %v305_v61, %v304_v60 }
 0x141   :  { %v373_v59 = vpop.f32.mrf.mxu1 }
 0x142   :  { %v374_v0 = vadd.f32 %v507_v33, %v373_v59 }
 0x144   :  { %v378_v2 = vmax.f32 %v374_v0, 0.0 }
 0x149   :  { %v375_v63 = vpop.f32.mrf.mxu1 }
 0x14a   :  { %v376_v1 = vadd.f32 %v507_v33, %v375_v63 }
 0x14c   :  { %v379_v3 = vmax.f32 %v376_v1, 0.0 }
 0x14e   :  { %v380_v4 = vpack.c.bf16 %v379_v3, %v378_v2 }
 0x1a3   :  { %v168_v46 = vpop.f32.mrf.mxu2 }
 0x1ab   :  { %v170_v47 = vpop.f32.mrf.mxu2 }
 0x1ac   :  { %v173_v48 = vpack.c.bf16 %v170_v47, %v168_v46 }
 0x1ae   :  { %184 = vmatpush.bf16.msra.mxu3 %v173_v48 }
 0x1b1   :  { %489 = vmatmul.msk.bf16.vlgmr.msra.gmra.mxu3 %vm123_vm1, %v641_v22 }
 0x1b2   :  { %242 = vmatpush.bf16.msrb.mxu3 %v501_v26 }
 0x1b6   :  { %243 = vmatpush.bf16.msrb.mxu3 %v500_v27 }
 0x1ba   :  { %316 = vmatpush.bf16.msra.mxu3 %v501_v26 }
 0x1be   :  { %317 = vmatpush.bf16.msra.mxu3 %v500_v27 }
 0x1c1   :  { %491 = vmatmul.msk.bf16.vlgmr.msrb.gmra.mxu3 %vm69_vm0, %v232_v55 }
 0x1c2   :  { %390 = vmatpush.bf16.msrb.mxu3 %v501_v26 }
 0x1c6   :  { %391 = vmatpush.bf16.msrb.mxu3 %v500_v27 }
 0x1d1   :  { %494 = vmatmul.msk.bf16.vlgmr.msra.gmra.mxu3 %vm69_vm0, %v306_v62 }
 0x1e1   :  { %497 = vmatmul.msk.bf16.vlgmr.msrb.gmra.mxu3 %vm69_vm0, %v380_v4 }
 0x234   :  { %v186_v8 = vpop.f32.mrf.mxu3 }
 0x235   :  { %v187_v9 = vadd.f32 %v670_v6, %v186_v8 }
 0x237   :  { %v191_v10 = vmax.f32 %v187_v9, 0.0 }
 0x239   :  { %v193_v11 = vsel %vm113_vm2, %v191_v10, -inf }
 0x23a   :  { %195 = vmax.xlane.f32.xlu0 %v193_v11 }
 0x23c   :  { %v188_v12 = vpop.f32.mrf.mxu3 }
 0x23d   :  { %v189_v13 = vadd.f32 %v670_v6, %v188_v12 }
 0x23f   :  { %v192_v14 = vmax.f32 %v189_v13, 0.0 }
 0x241   :  { %v194_v15 = vsel %vm113_vm2, %v192_v14, -inf }
 0x242   :  { %197 = vmax.xlane.f32.xlu0 %v194_v15 }
 0x244   :  { %v245_v16 = vpop.f32.mrf.mxu3 }
 0x24c   :  { %v247_v17 = vpop.f32.mrf.mxu3 }
 0x24d   :  { %v250_v18 = vpack.c.bf16 %v247_v17, %v245_v16 }
 0x24f   :  { %258 = vmatpush.bf16.msrb.mxu2 %v250_v18 }
 0x252   :  { %492 = vmatmul.msk.bf16.vlgmr.msrb.gmra.mxu2 %vm123_vm1, %v641_v22 }
 0x254   :  { %v319_v19 = vpop.f32.mrf.mxu3 }
 0x25c   :  { %v321_v20 = vpop.f32.mrf.mxu3 }
 0x25d   :  { %v324_v21 = vpack.c.bf16 %v321_v20, %v319_v19 }
 0x25f   :  { %332 = vmatpush.bf16.msra.mxu2 %v324_v21 }
 0x262   :  { %495 = vmatmul.msk.bf16.vlgmr.msra.gmra.mxu2 %vm123_vm1, %v641_v22 }
 0x264   :  { %v393_v23 = vpop.f32.mrf.mxu3 }
 0x26c   :  { %v395_v24 = vpop.f32.mrf.mxu3 }
 0x26d   :  { %v398_v25 = vpack.c.bf16 %v395_v24, %v393_v23 }
 0x26f   :  { %406 = vmatpush.bf16.msrb.mxu2 %v398_v25 }
 0x272   :  { %498 = vmatmul.msk.bf16.vlgmr.msrb.gmra.mxu2 %vm123_vm1, %v641_v22 }
 0x2ad   :  { %v196_v34 = vpop.xlane.xlu0 %195 }
 0x2ae   :  { %v199_v37 = vsub.f32 %v193_v11, %v196_v34 }
 0x2b0   :  { %v201_v39 = vmul.f32 1.442695, %v199_v37 }
 0x2b2   :  { %509 = vpow2.f32 %v201_v39 }
 0x2b5   :  { %v198_v41 = vpop.xlane.xlu0 %197 }
 0x2b6   :  { %v200_v44 = vsub.f32 %v194_v15, %v198_v41 }
 0x2b8   :  { %v203_v46 = vmul.f32 1.442695, %v200_v44  ;;  %v510_v49 = vpop.eup %509 }
 0x2b9   :  { %v205_v52 = vsel %vm113_vm2, %v510_v49, 0.0 }
 0x2ba   :  { %511 = vpow2.f32 %v203_v46 }
 0x2c0   :  { %v512_v55 = vpop.eup %511 }
 0x2c1   :  { %v206_v58 = vsel %vm113_vm2, %v512_v55, 0.0 }
 0x2d5   :  { %v260_v26 = vpop.f32.mrf.mxu2 }
 0x2d6   :  { %v261_v27 = vadd.f32 %v670_v6, %v260_v26 }
 0x2d8   :  { %v265_v28 = vmax.f32 %v261_v27, 0.0 }
 0x2da   :  { %v267_v29 = vsel %vm113_vm2, %v265_v28, -inf }
 0x2db   :  { %269 = vmax.xlane.f32.xlu1 %v267_v29 }
 0x2dd   :  { %v262_v30 = vpop.f32.mrf.mxu2 }
 0x2de   :  { %v263_v31 = vadd.f32 %v670_v6, %v262_v30 }
 0x2e0   :  { %v266_v32 = vmax.f32 %v263_v31, 0.0 }
 0x2e2   :  { %v268_v33 = vsel %vm113_vm2, %v266_v32, -inf }
 0x2e3   :  { %271 = vmax.xlane.f32.xlu1 %v268_v33 }
 0x2e5   :  { %v334_v35 = vpop.f32.mrf.mxu2 }
 0x2e6   :  { %v335_v22 = vadd.f32 %v670_v6, %v334_v35 }
 0x2e8   :  { %v339_v36 = vmax.f32 %v335_v22, 0.0 }
 0x2ea   :  { %v341_v38 = vsel %vm113_vm2, %v339_v36, -inf }
 0x2eb   :  { %343 = vmax.xlane.f32.xlu2 %v341_v38 }
 0x2ed   :  { %v336_v40 = vpop.f32.mrf.mxu2 }
 0x2ee   :  { %v337_v42 = vadd.f32 %v670_v6, %v336_v40 }
 0x2f0   :  { %v340_v43 = vmax.f32 %v337_v42, 0.0 }
 0x2f2   :  { %v342_v45 = vsel %vm113_vm2, %v340_v43, -inf }
 0x2f3   :  { %345 = vmax.xlane.f32.xlu2 %v342_v45 }
 0x2f5   :  { %v408_v47 = vpop.f32.mrf.mxu2 }
 0x2f6   :  { %v409_v48 = vadd.f32 %v670_v6, %v408_v47 }
 0x2f8   :  { %v413_v50 = vmax.f32 %v409_v48, 0.0 }
 0x2fa   :  { %v415_v51 = vsel %vm113_vm2, %v413_v50, -inf }
 0x2fb   :  { %417 = vmax.xlane.f32.xlu0 %v415_v51  ;;  %207 = vadd.xlane.f32.xlu2 %v205_v52 }
 0x2fd   :  { %v410_v53 = vpop.f32.mrf.mxu2 }
 0x2fe   :  { %v411_v54 = vadd.f32 %v670_v6, %v410_v53 }
 0x300   :  { %v414_v56 = vmax.f32 %v411_v54, 0.0 }
 0x302   :  { %v416_v57 = vsel %vm113_vm2, %v414_v56, -inf }
 0x303   :  { %419 = vmax.xlane.f32.xlu1 %v416_v57  ;;  %209 = vadd.xlane.f32.xlu0 %v206_v58 }
 0x34e   :  { %v270_v59 = vpop.xlane.xlu1 %269 }
 0x34f   :  { %v273_v60 = vsub.f32 %v267_v29, %v270_v59 }
 0x351   :  { %v275_v61 = vmul.f32 1.442695, %v273_v60 }
 0x353   :  { %513 = vpow2.f32 %v275_v61 }
 0x356   :  { %v272_v62 = vpop.xlane.xlu1 %271 }
 0x357   :  { %v274_v63 = vsub.f32 %v268_v33, %v272_v62 }
 0x359   :  { %v514_v0 = vpop.eup %513  ;;  %v277_v1 = vmul.f32 1.442695, %v274_v63 }
 0x35a   :  { %v279_v2 = vsel %vm113_vm2, %v514_v0, 0.0 }
 0x35b   :  { %515 = vpow2.f32 %v277_v1  ;;  %281 = vadd.xlane.f32.xlu1 %v279_v2 }
 0x35e   :  { %v344_v3 = vpop.xlane.xlu2 %343 }
 0x35f   :  { %v347_v4 = vsub.f32 %v341_v38, %v344_v3 }
 0x361   :  { %v516_v5 = vpop.eup %515  ;;  %v349_v6 = vmul.f32 1.442695, %v347_v4 }
 0x362   :  { %v280_v8 = vsel %vm113_vm2, %v516_v5, 0.0 }
 0x363   :  { %517 = vpow2.f32 %v349_v6  ;;  %283 = vadd.xlane.f32.xlu2 %v280_v8 }
 0x366   :  { %v346_v9 = vpop.xlane.xlu2 %345 }
 0x367   :  { %v348_v10 = vsub.f32 %v342_v45, %v346_v9 }
 0x369   :  { %v518_v11 = vpop.eup %517  ;;  %v351_v12 = vmul.f32 1.442695, %v348_v10 }
 0x36a   :  { %v353_v13 = vsel %vm113_vm2, %v518_v11, 0.0 }
 0x36b   :  { %519 = vpow2.f32 %v351_v12  ;;  %355 = vadd.xlane.f32.xlu0 %v353_v13 }
 0x36e   :  { %v208_v14 = vpop.xlane.xlu2 %207  ;;  %v418_v15 = vpop.xlane.xlu0 %417 }
 0x36f   :  { %521 = vrcp.f32 %v208_v14  ;;  %v421_v16 = vsub.f32 %v415_v51, %v418_v15 }
 0x371   :  { %v520_v17 = vpop.eup %519  ;;  %v423_v18 = vmul.f32 1.442695, %v421_v16 }
 0x372   :  { %v354_v19 = vsel %vm113_vm2, %v520_v17, 0.0 }
 0x373   :  { %523 = vpow2.f32 %v423_v18  ;;  %357 = vadd.xlane.f32.xlu1 %v354_v19 }
 0x375   :  { %v522_v20 = vpop.eup %521 }
 0x376   :  { %v213_v21 = vmul.f32 %v522_v20, %v205_v52  ;;  %v420_v23 = vpop.xlane.xlu1 %419  ;;  %v210_v24 = vpop.xlane.xlu0 %209 }
 0x377   :  { %v422_v25 = vsub.f32 %v416_v57, %v420_v23  ;;  %525 = vrcp.f32 %v210_v24 }
 0x378   :  { %437 = vst [vmem:[#allocation2] sm:$0xff] %v213_v21 }
 0x379   :  { %v524_v26 = vpop.eup %523  ;;  %v425_v27 = vmul.f32 1.442695, %v422_v25 }
 0x37a   :  { %v427_v28 = vsel %vm113_vm2, %v524_v26, 0.0 }
 0x37b   :  { %527 = vpow2.f32 %v425_v27  ;;  %429 = vadd.xlane.f32.xlu2 %v427_v28 }
 0x37d   :  { %v526_v29 = vpop.eup %525 }
 0x37e   :  { %v214_v30 = vmul.f32 %v526_v29, %v206_v58 }
 0x380   :  { %438 = vst [vmem:[#allocation2 + $0x8] sm:$0xff] %v214_v30 }
 0x381   :  { %v528_v31 = vpop.eup %527 }
 0x382   :  { %v428_v32 = vsel %vm113_vm2, %v528_v31, 0.0 }
 0x383   :  { %431 = vadd.xlane.f32.xlu0 %v428_v32 }
 0x3ce   :  { %v282_v33 = vpop.xlane.xlu1 %281 }
 0x3cf   :  { %529 = vrcp.f32 %v282_v33 }
 0x3d5   :  { %v530_v34 = vpop.eup %529 }
 0x3d6   :  { %v287_v35 = vmul.f32 %v530_v34, %v279_v2  ;;  %v284_v22 = vpop.xlane.xlu2 %283 }
 0x3d7   :  { %531 = vrcp.f32 %v284_v22 }
 0x3d8   :  { %439 = vst [vmem:[#allocation2 + $0x10] sm:$0xff] %v287_v35 }
 0x3dd   :  { %v532_v36 = vpop.eup %531 }
 0x3de   :  { %v288_v37 = vmul.f32 %v532_v36, %v280_v8  ;;  %v356_v38 = vpop.xlane.xlu0 %355 }
 0x3df   :  { %533 = vrcp.f32 %v356_v38 }
 0x3e0   :  { %440 = vst [vmem:[#allocation2 + $0x18] sm:$0xff] %v288_v37 }
 0x3e5   :  { %v534_v39 = vpop.eup %533 }
 0x3e6   :  { %v361_v40 = vmul.f32 %v534_v39, %v353_v13  ;;  %v358_v41 = vpop.xlane.xlu1 %357 }
 0x3e7   :  { %535 = vrcp.f32 %v358_v41 }
 0x3e8   :  { %441 = vst [vmem:[#allocation2 + $0x20] sm:$0xff] %v361_v40 }
 0x3ed   :  { %v536_v7 = vpop.eup %535 }
 0x3ee   :  { %v362_v42 = vmul.f32 %v536_v7, %v354_v19  ;;  %v430_v43 = vpop.xlane.xlu2 %429 }
 0x3ef   :  { %537 = vrcp.f32 %v430_v43 }
 0x3f0   :  { %442 = vst [vmem:[#allocation2 + $0x28] sm:$0xff] %v362_v42 }
 0x3f5   :  { %v538_v44 = vpop.eup %537 }
 0x3f6   :  { %v435_v45 = vmul.f32 %v538_v44, %v427_v28  ;;  %v432_v46 = vpop.xlane.xlu0 %431 }
 0x3f7   :  { %539 = vrcp.f32 %v432_v46 }
 0x3f8   :  { %443 = vst [vmem:[#allocation2 + $0x30] sm:$0xff] %v435_v45 }
 0x3fd   :  { %v540_v47 = vpop.eup %539 }
 0x3fe   :  { %v436_v48 = vmul.f32 %v540_v47, %v428_v32 }
 0x400   :  { %444 = vst [vmem:[#allocation2 + $0x38] sm:$0xff] %v436_v48 }
 0x401   :  { %457 = dma.vmem_to_hbm [thread:$0]  %s450_s22, 1024, %s452_s25, [#allocation3], %s568_s26, %s568_s26, %s569_s27  }
 0x402   :  { %565 = dma.done.wait [#allocation3], 1024  }
 0x403   :  { %566 = vsyncadd [#allocation3], 4294966272 }
 0x404   :  { %462 = vsyncpa [#allocation3], 1 }

</bundles_post_ra>
